<compile_context>
chip_gen: v7x
topology: tpu7x:2x2x1
jax: 0.10.0
libtpu: 0.0.40
codegen_flags: <defaults>
</compile_context>

<pallas_src>
import functools

import jax
import jax.numpy as jnp
from jax.experimental import pallas as pl
from jax.experimental.pallas import tpu as pltpu

BN_EPS = 1e-5


def _conv_bn_relu_pad_kernel(x_ref, w_ref, b_ref, o_ref, *, H, W, pad):
    """Fused (BN-folded 1x1 conv) + ReLU that also writes the zero-pad border.

    x_ref: (1, Cin, H*W)       unpadded input image, spatial flattened on lanes
    w_ref: (co_blk, Cin)       BN-folded conv weights (this output-channel block)
    b_ref: (co_blk, 1)         BN-folded bias
    o_ref: (1, co_blk, Hp*Wp)  padded output image (NCHW flat), fully written
    """
    Wp = W + 2 * pad

    x = x_ref[0]          # (Cin, L)       L = H*W
    w = w_ref[...]        # (co, Cin)
    b = b_ref[...]        # (co, 1)

    # Interior: tiny K=Cin contraction pushed onto the MXU, lane-dense over the
    # whole flattened image (memory-bound kernel -> compute fully hidden).
    y = jnp.dot(w, x, preferred_element_type=jnp.float32) + b    # (co, L)
    y = jnp.maximum(y, 0.0)

    # Border pixels see x == 0, so their output is the per-channel constant
    # ReLU(bias): fill the whole padded tile with it (no HBM read needed).
    border = jnp.maximum(b, 0.0)                                  # (co, 1)
    o_ref[0] = jnp.broadcast_to(border, o_ref.shape[1:])

    # Scatter the H interior rows into their padded flat positions.  All slice
    # bounds are static Python ints -> static (masked) lane-slice VMEM stores.
    for i in range(H):
        dst = (i + pad) * Wp + pad
        o_ref[0, :, dst:dst + W] = y[:, i * W:(i + 1) * W]


def model_forward(x_nchw, conv_w, bn_gamma, bn_beta, *, padding=2, eps=BN_EPS):
    """x_nchw: (N, 3, H, W) f32; conv_w: (16, 3, 1, 1); returns (N, 16, H+4, W+4)."""
    N, C, H, W = x_nchw.shape
    Cout = conv_w.shape[0]
    Hp, Wp = H + 2 * padding, W + 2 * padding
    L, Lp = H * W, Hp * Wp
    M_total = N * Lp                       # BN denominator (padded pixels included)

    x = x_nchw.astype(jnp.float32)
    Wm = conv_w.reshape(Cout, C).astype(jnp.float32)       # (Cout, Cin)
    gamma = bn_gamma.reshape(Cout).astype(jnp.float32)
    beta = bn_beta.reshape(Cout).astype(jnp.float32)

    # ---- analytic BN fold from single-pass input statistics -----------------
    # y = W x is linear, so mean_y = W mean_x and Var(y_c) = w_c^T Cov(x) w_c,
    # where mean_x / Cov(x) are over the *padded* input.  Zero border pixels add
    # nothing to sum/Gram, only to the denominator -> exact correction for free.
    s = jnp.sum(x, axis=(0, 2, 3))                          # (Cin,)
    G = jnp.einsum('nchw,ndhw->cd', x, x)                   # (Cin, Cin) uncentered
    mean_x = s / M_total
    cov_x = G / M_total - jnp.outer(mean_x, mean_x)

    mean_y = Wm @ mean_x                                    # (Cout,)
    var_y = jnp.einsum('oc,cd,od->o', Wm, cov_x, Wm)        # biased Var(y_c)
    var_y = jnp.maximum(var_y, 0.0)
    scale = gamma * jax.lax.rsqrt(var_y + eps)              # (Cout,)
    bias = beta - mean_y * scale                            # (Cout,)

    w_fold = Wm * scale[:, None]                            # (Cout, Cin)
    b_fold = bias.reshape(Cout, 1)                          # (Cout, 1)

    # ---- fused conv + BN + ReLU + padding kernel ----------------------------
    x_flat = x.reshape(N, C, L)            # free reshape (contiguous NCHW)

    co_blk = 8 if Cout % 8 == 0 else Cout  # sublane-aligned Cout split
    n_co = Cout // co_blk

    # Full-image blocks: input double-buffered with Cin padded to 8 sublanes,
    # output double-buffered.  Tiny at the spec shape; guard for huge images.
    vmem_est = 2 * (8 * L * 4 + co_blk * Lp * 4)
    if vmem_est > 24 * 1024 * 1024:
        # TODO(synk): add a row-banded spatial tiling for very large images.
        raise NotImplementedError("image too large for full-image VMEM blocks")

    kernel = functools.partial(_conv_bn_relu_pad_kernel, H=H, W=W, pad=padding)

    out_flat = pl.pallas_call(
        kernel,
        out_shape=jax.ShapeDtypeStruct((N, Cout, Lp), jnp.float32),
        grid=(N, n_co),
        in_specs=[
            # Full image per block; index is constant across the Cout axis, so
            # the input is DMA'd once per image and stays resident in VMEM.
            pl.BlockSpec((1, C, L), lambda n, co: (n, 0, 0)),
            pl.BlockSpec((co_blk, C), lambda n, co: (co, 0)),
            pl.BlockSpec((co_blk, 1), lambda n, co: (co, 0)),
        ],
        out_specs=pl.BlockSpec((1, co_blk, Lp), lambda n, co: (n, co, 0)),
        compiler_params=pltpu.CompilerParams(
            dimension_semantics=("parallel", "parallel"),
            vmem_limit_bytes=32 * 1024 * 1024,
        ),
    )(x_flat, w_fold, b_fold)

    # Free reshape: (N, Cout, Hp*Wp) is already padded NCHW memory order.
    return out_flat.reshape(N, Cout, Hp, Wp)


if __name__ == "__main__":
    key = jax.random.PRNGKey(0)
    k_x, k_w = jax.random.split(key)

    # Small shapes consistent with the module (spec input is 1x3x32x64; use batch=2).
    N, C, H, W = 2, 3, 32, 64
    x = jax.random.normal(k_x, (N, C, H, W), dtype=jnp.float32)

    # Parameters (shapes from __init__); BN gamma/beta at PyTorch default init.
    fan_in = C * 1 * 1
    bound = 1.0 / (fan_in ** 0.5)
    conv_w = jax.random.uniform(k_w, (16, C, 1, 1), jnp.float32, -bound, bound)
    bn_gamma = jnp.ones((16,), jnp.float32)
    bn_beta = jnp.zeros((16,), jnp.float32)

    fwd = jax.jit(model_forward)
    out = jax.block_until_ready(fwd(x, conv_w, bn_gamma, bn_beta))
    assert out.shape == (N, 16, H + 4, W + 4)

    # Pure-JAX reference of stage 1 (conv -> training-mode BN -> ReLU).
    xp = jnp.pad(x, ((0, 0), (0, 0), (2, 2), (2, 2)))
    y = jnp.einsum('oc,nchw->nohw', conv_w.reshape(16, C), xp)
    mu = jnp.mean(y, axis=(0, 2, 3), keepdims=True)
    var = jnp.mean((y - mu) ** 2, axis=(0, 2, 3), keepdims=True)
    ref = jnp.maximum((y - mu) * jax.lax.rsqrt(var + BN_EPS)
                      * bn_gamma.reshape(1, -1, 1, 1)
                      + bn_beta.reshape(1, -1, 1, 1), 0.0)
    max_err = float(jnp.max(jnp.abs(out - ref)))
    assert max_err < 1e-3, f"max abs err {max_err}"

    print("KERNEL_OK")
</pallas_src>

<mosaic_0001>
module attributes {stable_mosaic.version = 11 : i64} {
  func.func @_conv_bn_relu_pad_kernel(%arg0: i32, %arg1: i32, %arg2: memref<1x3x2048xf32, #tpu.memory_space<vmem>>, %arg3: memref<8x3xf32, #tpu.memory_space<vmem>>, %arg4: memref<8x1xf32, #tpu.memory_space<vmem>>, %arg5: memref<1x8x2448xf32, #tpu.memory_space<vmem>>) attributes {dimension_semantics = [#tpu.dimension_semantics<parallel>, #tpu.dimension_semantics<parallel>], iteration_bounds = array<i64: 2, 2>, scalar_prefetch = 0 : i64, scratch_operands = 0 : i64, tpu.core_type = #tpu.core_type<tc>, window_params = [{transform_indices = @transform_0, window_bounds = array<i64: 1, 3, 2048>}, {transform_indices = @transform_1, window_bounds = array<i64: 8, 3>}, {transform_indices = @transform_2, window_bounds = array<i64: 8, 1>}, {transform_indices = @transform_3, window_bounds = array<i64: 1, 8, 2448>}]} {
    %c0 = arith.constant 0 : index
    %c0_0 = arith.constant 0 : index
    %c0_1 = arith.constant 0 : index
    %0 = vector.load %arg2[%c0, %c0_0, %c0_1] : memref<1x3x2048xf32, #tpu.memory_space<vmem>>, vector<1x3x2048xf32>
    %1 = vector.shape_cast %0 : vector<1x3x2048xf32> to vector<3x2048xf32>
    %c0_2 = arith.constant 0 : index
    %c0_3 = arith.constant 0 : index
    %2 = vector.load %arg3[%c0_2, %c0_3] : memref<8x3xf32, #tpu.memory_space<vmem>>, vector<8x3xf32>
    %c0_4 = arith.constant 0 : index
    %c0_5 = arith.constant 0 : index
    %3 = vector.load %arg4[%c0_4, %c0_5] : memref<8x1xf32, #tpu.memory_space<vmem>>, vector<8x1xf32>
    %cst = arith.constant dense<0.000000e+00> : vector<8x2048xf32>
    %4 = tpu.matmul %2, %1, %cst {dimension_numbers = #tpu.dot_dimension_numbers<[1], [0], [0], [1], [0, 0, 1, 1], [], []>} : vector<8x3xf32>, vector<3x2048xf32>, vector<8x2048xf32> -> vector<8x2048xf32>
    %5 = vector.broadcast %3 : vector<8x1xf32> to vector<8x2048xf32>
    %6 = arith.addf %4, %5 : vector<8x2048xf32>
    %cst_6 = arith.constant 0.000000e+00 : f32
    %7 = vector.broadcast %cst_6 : f32 to vector<8x2048xf32>
    %8 = arith.maximumf %6, %7 : vector<8x2048xf32>
    %cst_7 = arith.constant 0.000000e+00 : f32
    %9 = vector.broadcast %cst_7 : f32 to vector<8x1xf32>
    %10 = arith.maximumf %3, %9 : vector<8x1xf32>
    %11 = vector.shape_cast %10 : vector<8x1xf32> to vector<8x1xf32>
    %12 = vector.broadcast %11 : vector<8x1xf32> to vector<8x2448xf32>
    %c0_8 = arith.constant 0 : index
    %c0_9 = arith.constant 0 : index
    %c0_10 = arith.constant 0 : index
    %13 = vector.load %arg5[%c0_8, %c0_9, %c0_10] : memref<1x8x2448xf32, #tpu.memory_space<vmem>>, vector<1x8x2448xf32>
    %14 = vector.shape_cast %13 : vector<1x8x2448xf32> to vector<8x2448xf32>
    %15 = vector.shape_cast %12 : vector<8x2448xf32> to vector<1x8x2448xf32>
    tpu.vector_store %arg5[%c0_8, %c0_9, %c0_10], %15 {strides = array<i32>} : memref<1x8x2448xf32, #tpu.memory_space<vmem>>, vector<1x8x2448xf32>,
    %16 = vector.extract_strided_slice %8 {offsets = [0, 0], sizes = [8, 64], strides = [1, 1]} : vector<8x2048xf32> to vector<8x64xf32>
    %c0_11 = arith.constant 0 : index
    %c0_12 = arith.constant 0 : index
    %c138 = arith.constant 138 : index
    %17 = vector.load %arg5[%c0_11, %c0_12, %c138] : memref<1x8x2448xf32, #tpu.memory_space<vmem>>, vector<1x8x64xf32>
    %18 = vector.shape_cast %17 : vector<1x8x64xf32> to vector<8x64xf32>
    %19 = vector.shape_cast %16 : vector<8x64xf32> to vector<1x8x64xf32>
    tpu.vector_store %arg5[%c0_11, %c0_12, %c138], %19 {strides = array<i32>} : memref<1x8x2448xf32, #tpu.memory_space<vmem>>, vector<1x8x64xf32>,
    %20 = vector.extract_strided_slice %8 {offsets = [0, 64], sizes = [8, 64], strides = [1, 1]} : vector<8x2048xf32> to vector<8x64xf32>
    %c0_13 = arith.constant 0 : index
    %c0_14 = arith.constant 0 : index
    %c206 = arith.constant 206 : index
    %21 = vector.load %arg5[%c0_13, %c0_14, %c206] : memref<1x8x2448xf32, #tpu.memory_space<vmem>>, vector<1x8x64xf32>
    %22 = vector.shape_cast %21 : vector<1x8x64xf32> to vector<8x64xf32>
    %23 = vector.shape_cast %20 : vector<8x64xf32> to vector<1x8x64xf32>
    tpu.vector_store %arg5[%c0_13, %c0_14, %c206], %23 {strides = array<i32>} : memref<1x8x2448xf32, #tpu.memory_space<vmem>>, vector<1x8x64xf32>,
    %24 = vector.extract_strided_slice %8 {offsets = [0, 128], sizes = [8, 64], strides = [1, 1]} : vector<8x2048xf32> to vector<8x64xf32>
    %c0_15 = arith.constant 0 : index
    %c0_16 = arith.constant 0 : index
    %c274 = arith.constant 274 : index
    %25 = vector.load %arg5[%c0_15, %c0_16, %c274] : memref<1x8x2448xf32, #tpu.memory_space<vmem>>, vector<1x8x64xf32>
    %26 = vector.shape_cast %25 : vector<1x8x64xf32> to vector<8x64xf32>
    %27 = vector.shape_cast %24 : vector<8x64xf32> to vector<1x8x64xf32>
    tpu.vector_store %arg5[%c0_15, %c0_16, %c274], %27 {strides = array<i32>} : memref<1x8x2448xf32, #tpu.memory_space<vmem>>, vector<1x8x64xf32>,
    %28 = vector.extract_strided_slice %8 {offsets = [0, 192], sizes = [8, 64], strides = [1, 1]} : vector<8x2048xf32> to vector<8x64xf32>
    %c0_17 = arith.constant 0 : index
    %c0_18 = arith.constant 0 : index
    %c342 = arith.constant 342 : index
    %29 = vector.load %arg5[%c0_17, %c0_18, %c342] : memref<1x8x2448xf32, #tpu.memory_space<vmem>>, vector<1x8x64xf32>
    %30 = vector.shape_cast %29 : vector<1x8x64xf32> to vector<8x64xf32>
    %31 = vector.shape_cast %28 : vector<8x64xf32> to vector<1x8x64xf32>
    tpu.vector_store %arg5[%c0_17, %c0_18, %c342], %31 {strides = array<i32>} : memref<1x8x2448xf32, #tpu.memory_space<vmem>>, vector<1x8x64xf32>,
    %32 = vector.extract_strided_slice %8 {offsets = [0, 256], sizes = [8, 64], strides = [1, 1]} : vector<8x2048xf32> to vector<8x64xf32>
    %c0_19 = arith.constant 0 : index
    %c0_20 = arith.constant 0 : index
    %c410 = arith.constant 410 : index
    %33 = vector.load %arg5[%c0_19, %c0_20, %c410] : memref<1x8x2448xf32, #tpu.memory_space<vmem>>, vector<1x8x64xf32>
    %34 = vector.shape_cast %33 : vector<1x8x64xf32> to vector<8x64xf32>
    %35 = vector.shape_cast %32 : vector<8x64xf32> to vector<1x8x64xf32>
    tpu.vector_store %arg5[%c0_19, %c0_20, %c410], %35 {strides = array<i32>} : memref<1x8x2448xf32, #tpu.memory_space<vmem>>, vector<1x8x64xf32>,
    %36 = vector.extract_strided_slice %8 {offsets = [0, 320], sizes = [8, 64], strides = [1, 1]} : vector<8x2048xf32> to vector<8x64xf32>
    %c0_21 = arith.constant 0 : index
    %c0_22 = arith.constant 0 : index
    %c478 = arith.constant 478 : index
    %37 = vector.load %arg5[%c0_21, %c0_22, %c478] : memref<1x8x2448xf32, #tpu.memory_space<vmem>>, vector<1x8x64xf32>
    %38 = vector.shape_cast %37 : vector<1x8x64xf32> to vector<8x64xf32>
    %39 = vector.shape_cast %36 : vector<8x64xf32> to vector<1x8x64xf32>
    tpu.vector_store %arg5[%c0_21, %c0_22, %c478], %39 {strides = array<i32>} : memref<1x8x2448xf32, #tpu.memory_space<vmem>>, vector<1x8x64xf32>,
    %40 = vector.extract_strided_slice %8 {offsets = [0, 384], sizes = [8, 64], strides = [1, 1]} : vector<8x2048xf32> to vector<8x64xf32>
    %c0_23 = arith.constant 0 : index
    %c0_24 = arith.constant 0 : index
    %c546 = arith.constant 546 : index
    %41 = vector.load %arg5[%c0_23, %c0_24, %c546] : memref<1x8x2448xf32, #tpu.memory_space<vmem>>, vector<1x8x64xf32>
    %42 = vector.shape_cast %41 : vector<1x8x64xf32> to vector<8x64xf32>
    %43 = vector.shape_cast %40 : vector<8x64xf32> to vector<1x8x64xf32>
    tpu.vector_store %arg5[%c0_23, %c0_24, %c546], %43 {strides = array<i32>} : memref<1x8x2448xf32, #tpu.memory_space<vmem>>, vector<1x8x64xf32>,
    %44 = vector.extract_strided_slice %8 {offsets = [0, 448], sizes = [8, 64], strides = [1, 1]} : vector<8x2048xf32> to vector<8x64xf32>
    %c0_25 = arith.constant 0 : index
    %c0_26 = arith.constant 0 : index
    %c614 = arith.constant 614 : index
    %45 = vector.load %arg5[%c0_25, %c0_26, %c614] : memref<1x8x2448xf32, #tpu.memory_space<vmem>>, vector<1x8x64xf32>
    %46 = vector.shape_cast %45 : vector<1x8x64xf32> to vector<8x64xf32>
    %47 = vector.shape_cast %44 : vector<8x64xf32> to vector<1x8x64xf32>
    tpu.vector_store %arg5[%c0_25, %c0_26, %c614], %47 {strides = array<i32>} : memref<1x8x2448xf32, #tpu.memory_space<vmem>>, vector<1x8x64xf32>,
    %48 = vector.extract_strided_slice %8 {offsets = [0, 512], sizes = [8, 64], strides = [1, 1]} : vector<8x2048xf32> to vector<8x64xf32>
    %c0_27 = arith.constant 0 : index
    %c0_28 = arith.constant 0 : index
    %c682 = arith.constant 682 : index
    %49 = vector.load %arg5[%c0_27, %c0_28, %c682] : memref<1x8x2448xf32, #tpu.memory_space<vmem>>, vector<1x8x64xf32>
    %50 = vector.shape_cast %49 : vector<1x8x64xf32> to vector<8x64xf32>
    %51 = vector.shape_cast %48 : vector<8x64xf32> to vector<1x8x64xf32>
    tpu.vector_store %arg5[%c0_27, %c0_28, %c682], %51 {strides = array<i32>} : memref<1x8x2448xf32, #tpu.memory_space<vmem>>, vector<1x8x64xf32>,
    %52 = vector.extract_strided_slice %8 {offsets = [0, 576], sizes = [8, 64], strides = [1, 1]} : vector<8x2048xf32> to vector<8x64xf32>
    %c0_29 = arith.constant 0 : index
    %c0_30 = arith.constant 0 : index
    %c750 = arith.constant 750 : index
    %53 = vector.load %arg5[%c0_29, %c0_30, %c750] : memref<1x8x2448xf32, #tpu.memory_space<vmem>>, vector<1x8x64xf32>
    %54 = vector.shape_cast %53 : vector<1x8x64xf32> to vector<8x64xf32>
    %55 = vector.shape_cast %52 : vector<8x64xf32> to vector<1x8x64xf32>
    tpu.vector_store %arg5[%c0_29, %c0_30, %c750], %55 {strides = array<i32>} : memref<1x8x2448xf32, #tpu.memory_space<vmem>>, vector<1x8x64xf32>,
    %56 = vector.extract_strided_slice %8 {offsets = [0, 640], sizes = [8, 64], strides = [1, 1]} : vector<8x2048xf32> to vector<8x64xf32>
    %c0_31 = arith.constant 0 : index
    %c0_32 = arith.constant 0 : index
    %c818 = arith.constant 818 : index
    %57 = vector.load %arg5[%c0_31, %c0_32, %c818] : memref<1x8x2448xf32, #tpu.memory_space<vmem>>, vector<1x8x64xf32>
    %58 = vector.shape_cast %57 : vector<1x8x64xf32> to vector<8x64xf32>
    %59 = vector.shape_cast %56 : vector<8x64xf32> to vector<1x8x64xf32>
    tpu.vector_store %arg5[%c0_31, %c0_32, %c818], %59 {strides = array<i32>} : memref<1x8x2448xf32, #tpu.memory_space<vmem>>, vector<1x8x64xf32>,
    %60 = vector.extract_strided_slice %8 {offsets = [0, 704], sizes = [8, 64], strides = [1, 1]} : vector<8x2048xf32> to vector<8x64xf32>
    %c0_33 = arith.constant 0 : index
    %c0_34 = arith.constant 0 : index
    %c886 = arith.constant 886 : index
    %61 = vector.load %arg5[%c0_33, %c0_34, %c886] : memref<1x8x2448xf32, #tpu.memory_space<vmem>>, vector<1x8x64xf32>
    %62 = vector.shape_cast %61 : vector<1x8x64xf32> to vector<8x64xf32>
    %63 = vector.shape_cast %60 : vector<8x64xf32> to vector<1x8x64xf32>
    tpu.vector_store %arg5[%c0_33, %c0_34, %c886], %63 {strides = array<i32>} : memref<1x8x2448xf32, #tpu.memory_space<vmem>>, vector<1x8x64xf32>,
    %64 = vector.extract_strided_slice %8 {offsets = [0, 768], sizes = [8, 64], strides = [1, 1]} : vector<8x2048xf32> to vector<8x64xf32>
    %c0_35 = arith.constant 0 : index
    %c0_36 = arith.constant 0 : index
    %c954 = arith.constant 954 : index
    %65 = vector.load %arg5[%c0_35, %c0_36, %c954] : memref<1x8x2448xf32, #tpu.memory_space<vmem>>, vector<1x8x64xf32>
    %66 = vector.shape_cast %65 : vector<1x8x64xf32> to vector<8x64xf32>
    %67 = vector.shape_cast %64 : vector<8x64xf32> to vector<1x8x64xf32>
    tpu.vector_store %arg5[%c0_35, %c0_36, %c954], %67 {strides = array<i32>} : memref<1x8x2448xf32, #tpu.memory_space<vmem>>, vector<1x8x64xf32>,
    %68 = vector.extract_strided_slice %8 {offsets = [0, 832], sizes = [8, 64], strides = [1, 1]} : vector<8x2048xf32> to vector<8x64xf32>
    %c0_37 = arith.constant 0 : index
    %c0_38 = arith.constant 0 : index
    %c1022 = arith.constant 1022 : index
    %69 = vector.load %arg5[%c0_37, %c0_38, %c1022] : memref<1x8x2448xf32, #tpu.memory_space<vmem>>, vector<1x8x64xf32>
    %70 = vector.shape_cast %69 : vector<1x8x64xf32> to vector<8x64xf32>
    %71 = vector.shape_cast %68 : vector<8x64xf32> to vector<1x8x64xf32>
    tpu.vector_store %arg5[%c0_37, %c0_38, %c1022], %71 {strides = array<i32>} : memref<1x8x2448xf32, #tpu.memory_space<vmem>>, vector<1x8x64xf32>,
    %72 = vector.extract_strided_slice %8 {offsets = [0, 896], sizes = [8, 64], strides = [1, 1]} : vector<8x2048xf32> to vector<8x64xf32>
    %c0_39 = arith.constant 0 : index
    %c0_40 = arith.constant 0 : index
    %c1090 = arith.constant 1090 : index
    %73 = vector.load %arg5[%c0_39, %c0_40, %c1090] : memref<1x8x2448xf32, #tpu.memory_space<vmem>>, vector<1x8x64xf32>
    %74 = vector.shape_cast %73 : vector<1x8x64xf32> to vector<8x64xf32>
    %75 = vector.shape_cast %72 : vector<8x64xf32> to vector<1x8x64xf32>
    tpu.vector_store %arg5[%c0_39, %c0_40, %c1090], %75 {strides = array<i32>} : memref<1x8x2448xf32, #tpu.memory_space<vmem>>, vector<1x8x64xf32>,
    %76 = vector.extract_strided_slice %8 {offsets = [0, 960], sizes = [8, 64], strides = [1, 1]} : vector<8x2048xf32> to vector<8x64xf32>
    %c0_41 = arith.constant 0 : index
    %c0_42 = arith.constant 0 : index
    %c1158 = arith.constant 1158 : index
    %77 = vector.load %arg5[%c0_41, %c0_42, %c1158] : memref<1x8x2448xf32, #tpu.memory_space<vmem>>, vector<1x8x64xf32>
    %78 = vector.shape_cast %77 : vector<1x8x64xf32> to vector<8x64xf32>
    %79 = vector.shape_cast %76 : vector<8x64xf32> to vector<1x8x64xf32>
    tpu.vector_store %arg5[%c0_41, %c0_42, %c1158], %79 {strides = array<i32>} : memref<1x8x2448xf32, #tpu.memory_space<vmem>>, vector<1x8x64xf32>,
    %80 = vector.extract_strided_slice %8 {offsets = [0, 1024], sizes = [8, 64], strides = [1, 1]} : vector<8x2048xf32> to vector<8x64xf32>
    %c0_43 = arith.constant 0 : index
    %c0_44 = arith.constant 0 : index
    %c1226 = arith.constant 1226 : index
    %81 = vector.load %arg5[%c0_43, %c0_44, %c1226] : memref<1x8x2448xf32, #tpu.memory_space<vmem>>, vector<1x8x64xf32>
    %82 = vector.shape_cast %81 : vector<1x8x64xf32> to vector<8x64xf32>
    %83 = vector.shape_cast %80 : vector<8x64xf32> to vector<1x8x64xf32>
    tpu.vector_store %arg5[%c0_43, %c0_44, %c1226], %83 {strides = array<i32>} : memref<1x8x2448xf32, #tpu.memory_space<vmem>>, vector<1x8x64xf32>,
    %84 = vector.extract_strided_slice %8 {offsets = [0, 1088], sizes = [8, 64], strides = [1, 1]} : vector<8x2048xf32> to vector<8x64xf32>
    %c0_45 = arith.constant 0 : index
    %c0_46 = arith.constant 0 : index
    %c1294 = arith.constant 1294 : index
    %85 = vector.load %arg5[%c0_45, %c0_46, %c1294] : memref<1x8x2448xf32, #tpu.memory_space<vmem>>, vector<1x8x64xf32>
    %86 = vector.shape_cast %85 : vector<1x8x64xf32> to vector<8x64xf32>
    %87 = vector.shape_cast %84 : vector<8x64xf32> to vector<1x8x64xf32>
    tpu.vector_store %arg5[%c0_45, %c0_46, %c1294], %87 {strides = array<i32>} : memref<1x8x2448xf32, #tpu.memory_space<vmem>>, vector<1x8x64xf32>,
    %88 = vector.extract_strided_slice %8 {offsets = [0, 1152], sizes = [8, 64], strides = [1, 1]} : vector<8x2048xf32> to vector<8x64xf32>
    %c0_47 = arith.constant 0 : index
    %c0_48 = arith.constant 0 : index
    %c1362 = arith.constant 1362 : index
    %89 = vector.load %arg5[%c0_47, %c0_48, %c1362] : memref<1x8x2448xf32, #tpu.memory_space<vmem>>, vector<1x8x64xf32>
    %90 = vector.shape_cast %89 : vector<1x8x64xf32> to vector<8x64xf32>
    %91 = vector.shape_cast %88 : vector<8x64xf32> to vector<1x8x64xf32>
    tpu.vector_store %arg5[%c0_47, %c0_48, %c1362], %91 {strides = array<i32>} : memref<1x8x2448xf32, #tpu.memory_space<vmem>>, vector<1x8x64xf32>,
    %92 = vector.extract_strided_slice %8 {offsets = [0, 1216], sizes = [8, 64], strides = [1, 1]} : vector<8x2048xf32> to vector<8x64xf32>
    %c0_49 = arith.constant 0 : index
    %c0_50 = arith.constant 0 : index
    %c1430 = arith.constant 1430 : index
    %93 = vector.load %arg5[%c0_49, %c0_50, %c1430] : memref<1x8x2448xf32, #tpu.memory_space<vmem>>, vector<1x8x64xf32>
    %94 = vector.shape_cast %93 : vector<1x8x64xf32> to vector<8x64xf32>
    %95 = vector.shape_cast %92 : vector<8x64xf32> to vector<1x8x64xf32>
    tpu.vector_store %arg5[%c0_49, %c0_50, %c1430], %95 {strides = array<i32>} : memref<1x8x2448xf32, #tpu.memory_space<vmem>>, vector<1x8x64xf32>,
    %96 = vector.extract_strided_slice %8 {offsets = [0, 1280], sizes = [8, 64], strides = [1, 1]} : vector<8x2048xf32> to vector<8x64xf32>
    %c0_51 = arith.constant 0 : index
    %c0_52 = arith.constant 0 : index
    %c1498 = arith.constant 1498 : index
    %97 = vector.load %arg5[%c0_51, %c0_52, %c1498] : memref<1x8x2448xf32, #tpu.memory_space<vmem>>, vector<1x8x64xf32>
    %98 = vector.shape_cast %97 : vector<1x8x64xf32> to vector<8x64xf32>
    %99 = vector.shape_cast %96 : vector<8x64xf32> to vector<1x8x64xf32>
    tpu.vector_store %arg5[%c0_51, %c0_52, %c1498], %99 {strides = array<i32>} : memref<1x8x2448xf32, #tpu.memory_space<vmem>>, vector<1x8x64xf32>,
    %100 = vector.extract_strided_slice %8 {offsets = [0, 1344], sizes = [8, 64], strides = [1, 1]} : vector<8x2048xf32> to vector<8x64xf32>
    %c0_53 = arith.constant 0 : index
    %c0_54 = arith.constant 0 : index
    %c1566 = arith.constant 1566 : index
    %101 = vector.load %arg5[%c0_53, %c0_54, %c1566] : memref<1x8x2448xf32, #tpu.memory_space<vmem>>, vector<1x8x64xf32>
    %102 = vector.shape_cast %101 : vector<1x8x64xf32> to vector<8x64xf32>
    %103 = vector.shape_cast %100 : vector<8x64xf32> to vector<1x8x64xf32>
    tpu.vector_store %arg5[%c0_53, %c0_54, %c1566], %103 {strides = array<i32>} : memref<1x8x2448xf32, #tpu.memory_space<vmem>>, vector<1x8x64xf32>,
    %104 = vector.extract_strided_slice %8 {offsets = [0, 1408], sizes = [8, 64], strides = [1, 1]} : vector<8x2048xf32> to vector<8x64xf32>
    %c0_55 = arith.constant 0 : index
    %c0_56 = arith.constant 0 : index
    %c1634 = arith.constant 1634 : index
    %105 = vector.load %arg5[%c0_55, %c0_56, %c1634] : memref<1x8x2448xf32, #tpu.memory_space<vmem>>, vector<1x8x64xf32>
    %106 = vector.shape_cast %105 : vector<1x8x64xf32> to vector<8x64xf32>
    %107 = vector.shape_cast %104 : vector<8x64xf32> to vector<1x8x64xf32>
    tpu.vector_store %arg5[%c0_55, %c0_56, %c1634], %107 {strides = array<i32>} : memref<1x8x2448xf32, #tpu.memory_space<vmem>>, vector<1x8x64xf32>,
    %108 = vector.extract_strided_slice %8 {offsets = [0, 1472], sizes = [8, 64], strides = [1, 1]} : vector<8x2048xf32> to vector<8x64xf32>
    %c0_57 = arith.constant 0 : index
    %c0_58 = arith.constant 0 : index
    %c1702 = arith.constant 1702 : index
    %109 = vector.load %arg5[%c0_57, %c0_58, %c1702] : memref<1x8x2448xf32, #tpu.memory_space<vmem>>, vector<1x8x64xf32>
    %110 = vector.shape_cast %109 : vector<1x8x64xf32> to vector<8x64xf32>
    %111 = vector.shape_cast %108 : vector<8x64xf32> to vector<1x8x64xf32>
    tpu.vector_store %arg5[%c0_57, %c0_58, %c1702], %111 {strides = array<i32>} : memref<1x8x2448xf32, #tpu.memory_space<vmem>>, vector<1x8x64xf32>,
    %112 = vector.extract_strided_slice %8 {offsets = [0, 1536], sizes = [8, 64], strides = [1, 1]} : vector<8x2048xf32> to vector<8x64xf32>
    %c0_59 = arith.constant 0 : index
    %c0_60 = arith.constant 0 : index
    %c1770 = arith.constant 1770 : index
    %113 = vector.load %arg5[%c0_59, %c0_60, %c1770] : memref<1x8x2448xf32, #tpu.memory_space<vmem>>, vector<1x8x64xf32>
    %114 = vector.shape_cast %113 : vector<1x8x64xf32> to vector<8x64xf32>
    %115 = vector.shape_cast %112 : vector<8x64xf32> to vector<1x8x64xf32>
    tpu.vector_store %arg5[%c0_59, %c0_60, %c1770], %115 {strides = array<i32>} : memref<1x8x2448xf32, #tpu.memory_space<vmem>>, vector<1x8x64xf32>,
    %116 = vector.extract_strided_slice %8 {offsets = [0, 1600], sizes = [8, 64], strides = [1, 1]} : vector<8x2048xf32> to vector<8x64xf32>
    %c0_61 = arith.constant 0 : index
    %c0_62 = arith.constant 0 : index
    %c1838 = arith.constant 1838 : index
    %117 = vector.load %arg5[%c0_61, %c0_62, %c1838] : memref<1x8x2448xf32, #tpu.memory_space<vmem>>, vector<1x8x64xf32>
    %118 = vector.shape_cast %117 : vector<1x8x64xf32> to vector<8x64xf32>
    %119 = vector.shape_cast %116 : vector<8x64xf32> to vector<1x8x64xf32>
    tpu.vector_store %arg5[%c0_61, %c0_62, %c1838], %119 {strides = array<i32>} : memref<1x8x2448xf32, #tpu.memory_space<vmem>>, vector<1x8x64xf32>,
    %120 = vector.extract_strided_slice %8 {offsets = [0, 1664], sizes = [8, 64], strides = [1, 1]} : vector<8x2048xf32> to vector<8x64xf32>
    %c0_63 = arith.constant 0 : index
    %c0_64 = arith.constant 0 : index
    %c1906 = arith.constant 1906 : index
    %121 = vector.load %arg5[%c0_63, %c0_64, %c1906] : memref<1x8x2448xf32, #tpu.memory_space<vmem>>, vector<1x8x64xf32>
    %122 = vector.shape_cast %121 : vector<1x8x64xf32> to vector<8x64xf32>
    %123 = vector.shape_cast %120 : vector<8x64xf32> to vector<1x8x64xf32>
    tpu.vector_store %arg5[%c0_63, %c0_64, %c1906], %123 {strides = array<i32>} : memref<1x8x2448xf32, #tpu.memory_space<vmem>>, vector<1x8x64xf32>,
    %124 = vector.extract_strided_slice %8 {offsets = [0, 1728], sizes = [8, 64], strides = [1, 1]} : vector<8x2048xf32> to vector<8x64xf32>
    %c0_65 = arith.constant 0 : index
    %c0_66 = arith.constant 0 : index
    %c1974 = arith.constant 1974 : index
    %125 = vector.load %arg5[%c0_65, %c0_66, %c1974] : memref<1x8x2448xf32, #tpu.memory_space<vmem>>, vector<1x8x64xf32>
    %126 = vector.shape_cast %125 : vector<1x8x64xf32> to vector<8x64xf32>
    %127 = vector.shape_cast %124 : vector<8x64xf32> to vector<1x8x64xf32>
    tpu.vector_store %arg5[%c0_65, %c0_66, %c1974], %127 {strides = array<i32>} : memref<1x8x2448xf32, #tpu.memory_space<vmem>>, vector<1x8x64xf32>,
    %128 = vector.extract_strided_slice %8 {offsets = [0, 1792], sizes = [8, 64], strides = [1, 1]} : vector<8x2048xf32> to vector<8x64xf32>
    %c0_67 = arith.constant 0 : index
    %c0_68 = arith.constant 0 : index
    %c2042 = arith.constant 2042 : index
    %129 = vector.load %arg5[%c0_67, %c0_68, %c2042] : memref<1x8x2448xf32, #tpu.memory_space<vmem>>, vector<1x8x64xf32>
    %130 = vector.shape_cast %129 : vector<1x8x64xf32> to vector<8x64xf32>
    %131 = vector.shape_cast %128 : vector<8x64xf32> to vector<1x8x64xf32>
    tpu.vector_store %arg5[%c0_67, %c0_68, %c2042], %131 {strides = array<i32>} : memref<1x8x2448xf32, #tpu.memory_space<vmem>>, vector<1x8x64xf32>,
    %132 = vector.extract_strided_slice %8 {offsets = [0, 1856], sizes = [8, 64], strides = [1, 1]} : vector<8x2048xf32> to vector<8x64xf32>
    %c0_69 = arith.constant 0 : index
    %c0_70 = arith.constant 0 : index
    %c2110 = arith.constant 2110 : index
    %133 = vector.load %arg5[%c0_69, %c0_70, %c2110] : memref<1x8x2448xf32, #tpu.memory_space<vmem>>, vector<1x8x64xf32>
    %134 = vector.shape_cast %133 : vector<1x8x64xf32> to vector<8x64xf32>
    %135 = vector.shape_cast %132 : vector<8x64xf32> to vector<1x8x64xf32>
    tpu.vector_store %arg5[%c0_69, %c0_70, %c2110], %135 {strides = array<i32>} : memref<1x8x2448xf32, #tpu.memory_space<vmem>>, vector<1x8x64xf32>,
    %136 = vector.extract_strided_slice %8 {offsets = [0, 1920], sizes = [8, 64], strides = [1, 1]} : vector<8x2048xf32> to vector<8x64xf32>
    %c0_71 = arith.constant 0 : index
    %c0_72 = arith.constant 0 : index
    %c2178 = arith.constant 2178 : index
    %137 = vector.load %arg5[%c0_71, %c0_72, %c2178] : memref<1x8x2448xf32, #tpu.memory_space<vmem>>, vector<1x8x64xf32>
    %138 = vector.shape_cast %137 : vector<1x8x64xf32> to vector<8x64xf32>
    %139 = vector.shape_cast %136 : vector<8x64xf32> to vector<1x8x64xf32>
    tpu.vector_store %arg5[%c0_71, %c0_72, %c2178], %139 {strides = array<i32>} : memref<1x8x2448xf32, #tpu.memory_space<vmem>>, vector<1x8x64xf32>,
    %140 = vector.extract_strided_slice %8 {offsets = [0, 1984], sizes = [8, 64], strides = [1, 1]} : vector<8x2048xf32> to vector<8x64xf32>
    %c0_73 = arith.constant 0 : index
    %c0_74 = arith.constant 0 : index
    %c2246 = arith.constant 2246 : index
    %141 = vector.load %arg5[%c0_73, %c0_74, %c2246] : memref<1x8x2448xf32, #tpu.memory_space<vmem>>, vector<1x8x64xf32>
    %142 = vector.shape_cast %141 : vector<1x8x64xf32> to vector<8x64xf32>
    %143 = vector.shape_cast %140 : vector<8x64xf32> to vector<1x8x64xf32>
    tpu.vector_store %arg5[%c0_73, %c0_74, %c2246], %143 {strides = array<i32>} : memref<1x8x2448xf32, #tpu.memory_space<vmem>>, vector<1x8x64xf32>,
    return
  }
  func.func @transform_0(%arg0: i32, %arg1: i32) -> (i32, i32, i32) {
    %c0_i32 = arith.constant 0 : i32
    %c0_i32_0 = arith.constant 0 : i32
    %c0_i32_1 = arith.constant 0 : i32
    return %arg0, %c0_i32, %c0_i32_0 : i32, i32, i32
  }
  func.func @transform_1(%arg0: i32, %arg1: i32) -> (i32, i32) {
    %c0_i32 = arith.constant 0 : i32
    %c0_i32_0 = arith.constant 0 : i32
    return %arg1, %c0_i32 : i32, i32
  }
  func.func @transform_2(%arg0: i32, %arg1: i32) -> (i32, i32) {
    %c0_i32 = arith.constant 0 : i32
    %c0_i32_0 = arith.constant 0 : i32
    return %arg1, %c0_i32 : i32, i32
  }
  func.func @transform_3(%arg0: i32, %arg1: i32) -> (i32, i32, i32) {
    %c0_i32 = arith.constant 0 : i32
    %c0_i32_0 = arith.constant 0 : i32
    return %arg0, %arg1, %c0_i32 : i32, i32, i32
  }
}

</mosaic_0001>

<bundles_post_ra>
// kernel: model_forward.1
= control target key start
LH: loop header
LB: loop body
LE: loop exit
PB: predicated region body
PF: predicated region fallthrough
CT: control target
= control target key end

     0   :  { %s1440_s12 = smov 0   ;;  %s1442_s13 = smov 0   ;;  %s1633_s0 = inlined_call_operand.vmem [shape: f32[2,3,2048], index: 0, kind: input, shape index: {}]   ;;  %s1634_s1 = inlined_call_operand.vmem [shape: f32[16,3], index: 1, kind: input, shape index: {}]   ;;  %s1635_s2 = inlined_call_operand.vmem [shape: f32[16,1], index: 2, kind: input, shape index: {}]   ;;  %s1636_s3 = inlined_call_operand.vmem [shape: f32[2,16,2448], index: 3, kind: output, shape index: {}]  }
   0x1   :  { %s1444_s14 = smov 0   ;;  %s1446_s15 = smov 0  }
   0x2   :  { %s1448_s16 = smov 0  }
   0x3 LB: > { %s22_s17 = sadd.s32 1, %s1376_s14  ;;  %s25_s18 = sadd.s32 1, %s1380_s15  ;;  %s1384_s16 = sphi %s1448_s16, %s13_s16   ;;  %s1380_s15 = sphi %s1446_s15, %s1640_s15   ;;  %s1376_s14 = sphi %s1444_s14, %s1639_s14   ;;  %s1372_s13 = sphi %s1442_s13, %s1638_s13   ;;  %s1368_s12 = sphi %s1440_s12, %s1637_s12  }
   0x4   : > { %p23_p0 = scmp.ge.s32.totalorder %s22_s17, 2  ;;  %p1228_p1 = scmp.ge.s32.totalorder %s1384_s16, 1 }
   0x5   : > { %p169_p2 = scmp.lt.s32.totalorder %s1384_s16, 5 }
   0x6   : > { %s1642_s17 = smov (%p23_p0, %s22_s17), 0  ;;  %s1644_s18 = smov (!%p23_p0, %s25_s18), %s1380_s15 }
   0x7   : > { %p170_p3 = pnand %p1228_p1, %p169_p2  ;;  %p27_p4 = scmp.ge.s32.totalorder %s1644_s18, 2 }
   0x8   : > { %p205_p5 = scmp.lt.s32.totalorder (!%p170_p3), %s1372_s13, 1  ;;  %p210_p6 = scmp.lt.s32.totalorder (!%p170_p3), %s1368_s12, 1  ;;  %v1386_v0 = vmov (!%p170_p3), 0.0   ;;  %v1387_v1 = vmov (!%p170_p3), 0   ;;  %vm262_vm0 = vcmask (!%p170_p3), 1042432   ;;  %vm258_vm1 = vcmask (!%p170_p3), 23552  }
   0x9   : > { %s1646_s18 = smov (%p27_p4, %s1644_s18), 0  ;;  %173 = sbr.rel (%p170_p3) target bundleno = 421 (0x1a5), region = 32 }
   0xa   : > { %359 = vmatprep.mubr.f32.mxu0 (!%p170_p3), %v1386_v0  ;;  %430 = vmatprep.mubr.f32.mxu1 (!%p170_p3), %v1386_v0  ;;  %vm904_vm2 = vcmask (!%p170_p3), 130048   ;;  %s1388_s10 = smov (!%p170_p3), 10   ;;  %s1389_s11 = smov (!%p170_p3), 22   ;;  %vm910_vm3 = vcmask (!%p170_p3), 605264   ;;  %vm930_vm4 = vcmask (!%p170_p3), 179200   ;;  %vm915_vm5 = vcmask (!%p170_p3), 1048176  }
   0xb   : > { %1337 = vset.pattern.permute.xlu0 (!%p170_p3), %v1387_v1  ;;  %s1394_s21 = smov (!%p170_p3), 26   ;;  %s1395_s22 = smov (!%p170_p3), 34   ;;  %vm917_vm6 = vcmask (!%p170_p3), 113664   ;;  %vm956_vm7 = vcmask (!%p170_p3), 310272   ;;  %vm943_vm8 = vcmask (!%p170_p3), 244736   ;;  %vm923_vm9 = vcmask (!%p170_p3), 670864  }
   0xc   : > { %s1398_s25 = smov (!%p170_p3), 42   ;;  %s1399_s26 = smov (!%p170_p3), 54   ;;  %vm928_vm10 = vcmask (!%p170_p3), 1048240   ;;  %vm936_vm11 = vcmask (!%p170_p3), 736464   ;;  %vm941_vm12 = vcmask (!%p170_p3), 1048304   ;;  %vm949_vm13 = vcmask (!%p170_p3), 802064  }
   0xd   : > { %s1403_s30 = smov (!%p170_p3), 74   ;;  %s1404_s4 = smov (!%p170_p3), 70   ;;  %vm954_vm14 = vcmask (!%p170_p3), 1048368   ;;  %vm969_vm15 = vcmask (!%p170_p3), 375808  }
   0xe   : > { %s1407_s7 = smov (!%p170_p3), 78   ;;  %s1408_s8 = smov (!%p170_p3), 98  }
  0x10   : > { %s1648_s13 = smov (!%p205_p5, %s1372_s13), 1  ;;  %s1650_s12 = smov (!%p210_p6, %s1368_s12), 1 }
  0x11   : > { %s1260_s19 = sshll.u32 %s1648_s13, 6  ;;  %s1262_s20 = smul.u32 40, %s1648_s13 }
  0x12   : > { %s1475_s23 = scalar_lea.vmem %s1633_s0, %s1260_s19  ;;  %s1231_s24 = sshll.u32 %s1650_s12, 3 }
  0x13   : > { %v227_v2 = vld [vmem:[%s1475_s23] sm:$0x77]  ;;  %v228_v3 = vld [vmem:[%s1475_s23 + $0x8] sm:$0x77]  ;;  %s213_s27 = scalar_lea.vmem %s1634_s1, %s1231_s24  ;;  %s1261_s28 = smul.u32 20, %s1650_s12 }
  0x14   : > { %v250_v4 = vcombine.high %v227_v2, %v227_v2  ;;  %v251_v5 = vcombine.high %v228_v3, %v228_v3  ;;  %v229_v6 = vld [vmem:[%s1475_s23 + $0x10] sm:$0x77]  ;;  %v230_v7 = vld [vmem:[%s1475_s23 + $0x18] sm:$0x77]  ;;  %v235_v8 = vld [vmem:[%s213_s27] sm:$0xff]  ;;  %s217_s5 = scalar_lea.vmem %s1635_s2, %s1231_s24  ;;  %s1390_s12 = smov 14  }
  0x15   : > { %s1488_s29 = sadd.s32 %s1262_s20, %s1261_s28  ;;  %v252_v9 = vcombine.high %v229_v6, %v229_v6  ;;  %v253_v10 = vcombine.high %v230_v7, %v230_v7  ;;  %v231_v11 = vld [vmem:[%s1475_s23 + $0x20] sm:$0x77]  ;;  %v232_v12 = vld [vmem:[%s1475_s23 + $0x28] sm:$0x77]  ;;  %v233_v15 = vld [vmem:[%s1475_s23 + $0x30] sm:$0x77] }
  0x16   : > { %1234 = vmatprep.subr.msk.mxu0 %vm262_vm0, %v250_v4  ;;  %1237 = vmatprep.subr.msk.mxu1 %vm262_vm0, %v251_v5  ;;  %v254_v13 = vcombine.high %v231_v11, %v231_v11  ;;  %v255_v14 = vcombine.high %v232_v12, %v232_v12  ;;  %v234_v16 = vld [vmem:[%s1475_s23 + $0x38] sm:$0x77]  ;;  %v256_v17 = vcombine.high %v233_v15, %v233_v15  ;;  %v236_v19 = vld [vmem:[%s217_s5] sm:$0xff]  ;;  %s1233_s6 = sshll.u32 %s1488_s29, 3  ;;  %s1391_s13 = smov 38  }
  0x17   : > { %1235 = vmatpush1.msk.msra.mxu0 %vm262_vm0, %v227_v2  ;;  %1238 = vmatpush1.msk.msra.mxu1 %vm262_vm0, %v228_v3  ;;  %v257_v18 = vcombine.high %v234_v16, %v234_v16  ;;  %v879_v20 = vmax.f32 %v236_v19, 0.0  ;;  %s1529_s9 = scalar_lea.vmem %s1636_s3, %s1233_s6  ;;  %s1392_s19 = smov 30  }
  0x18   : > { %1236 = vmatmul.mubr.msk.f32.vlgmr.msra.gmra.mrb[0].mxu0 %vm258_vm1, %v235_v8  ;;  %1239 = vmatmul.mubr.msk.f32.vlgmr.msra.gmra.mrb[0].mxu1 %vm258_vm1, %v235_v8  ;;  %s1393_s20 = smov 18   ;;  %s1396_s23 = smov 46  }
  0x19   : > { %1240 = vmatprep.subr.msk.mxu0 %vm262_vm0, %v252_v9  ;;  %1243 = vmatprep.subr.msk.mxu1 %vm262_vm0, %v253_v10  ;;  %s1397_s24 = smov 62   ;;  %s1400_s27 = smov 58  }
  0x1a   : > { %1241 = vmatpush1.msk.msra.mxu0 %vm262_vm0, %v229_v6  ;;  %501 = vmatprep.mubr.f32.mxu0 %v1386_v0  ;;  %s1401_s28 = smov 50   ;;  %s1402_s29 = smov 66  }
  0x1b   : > { %1244 = vmatpush1.msk.msra.mxu1 %vm262_vm0, %v230_v7  ;;  %572 = vmatprep.mubr.f32.mxu1 %v1386_v0  ;;  %s1405_s5 = smov 90   ;;  %s1406_s6 = smov 82  }
  0x1c   : > { %1242 = vmatmul.mubr.msk.f32.vlgmr.msra.gmra.mrb[2].mxu0 %vm258_vm1, %v235_v8  ;;  %1245 = vmatmul.mubr.msk.f32.vlgmr.msra.gmra.mrb[2].mxu1 %vm258_vm1, %v235_v8 }
  0x1d   : > { %1246 = vmatprep.subr.msk.mxu0 %vm262_vm0, %v254_v13  ;;  %1249 = vmatprep.subr.msk.mxu1 %vm262_vm0, %v255_v14 }
  0x1e   : > { %1247 = vmatpush1.msk.msra.mxu0 %vm262_vm0, %v231_v11  ;;  %643 = vmatprep.mubr.f32.mxu0 %v1386_v0 }
  0x1f   : > { %1250 = vmatpush1.msk.msra.mxu1 %vm262_vm0, %v232_v12  ;;  %714 = vmatprep.mubr.f32.mxu1 %v1386_v0 }
  0x20   : > { %1248 = vmatmul.mubr.msk.f32.vlgmr.msra.gmra.mrb[4].mxu0 %vm258_vm1, %v235_v8  ;;  %1251 = vmatmul.mubr.msk.f32.vlgmr.msra.gmra.mrb[4].mxu1 %vm258_vm1, %v235_v8 }
  0x21   : > { %1252 = vmatprep.subr.msk.mxu0 %vm262_vm0, %v256_v17  ;;  %1255 = vmatprep.subr.msk.mxu1 %vm262_vm0, %v257_v18 }
  0x22   : > { %1253 = vmatpush1.msk.msra.mxu0 %vm262_vm0, %v233_v15  ;;  %785 = vmatprep.mubr.f32.mxu0 %v1386_v0 }
  0x23   : > { %1256 = vmatpush1.msk.msra.mxu1 %vm262_vm0, %v234_v16  ;;  %856 = vmatprep.mubr.f32.mxu1 %v1386_v0  ;;  %vm995_vm0 = vcmask 506880  }
  0x24   : > { %1254 = vmatmul.mubr.msk.f32.vlgmr.msra.gmra.mrb[6].mxu0 %vm258_vm1, %v235_v8  ;;  %1257 = vmatmul.mubr.msk.f32.vlgmr.msra.gmra.mrb[6].mxu1 %vm258_vm1, %v235_v8  ;;  %vm962_vm1 = vcmask 867664  }
  0x25   : > { %239 = vperm.xlu0 %1337, %v236_v19  }
  0x29   : > { %882 = vperm.xlu0 %1337, %v879_v20  }
  0xa4   : > { %v1524_v21 = vpop.permute.xlu0 %239 }
  0xa8   : > { %v883_v22 = vpop.permute.xlu0 %882 }
  0xa9   : > { %885 = vst [vmem:[%s1529_s9] sm:$0xff] %v883_v22  ;;  %905 = vst.msk [vmem:[%s1529_s9 + $0x98] sm:$0xff] %vm904_vm2, %v883_v22  ;;  %vm967_vm2 = vcmask 1048432  }
  0xaa   : > { %886 = vst [vmem:[%s1529_s9 + $0x8] sm:$0xff] %v883_v22  ;;  %887 = vst [vmem:[%s1529_s9 + $0x10] sm:$0xff] %v883_v22 }
  0xab   : > { %888 = vst [vmem:[%s1529_s9 + $0x18] sm:$0xff] %v883_v22  ;;  %889 = vst [vmem:[%s1529_s9 + $0x20] sm:$0xff] %v883_v22 }
  0xac   : > { %890 = vst [vmem:[%s1529_s9 + $0x28] sm:$0xff] %v883_v22  ;;  %891 = vst [vmem:[%s1529_s9 + $0x30] sm:$0xff] %v883_v22 }
  0xad   : > { %892 = vst [vmem:[%s1529_s9 + $0x38] sm:$0xff] %v883_v22  ;;  %893 = vst [vmem:[%s1529_s9 + $0x40] sm:$0xff] %v883_v22 }
  0xae   : > { %894 = vst [vmem:[%s1529_s9 + $0x48] sm:$0xff] %v883_v22  ;;  %895 = vst [vmem:[%s1529_s9 + $0x50] sm:$0xff] %v883_v22 }
  0xaf   : > { %896 = vst [vmem:[%s1529_s9 + $0x58] sm:$0xff] %v883_v22  ;;  %897 = vst [vmem:[%s1529_s9 + $0x60] sm:$0xff] %v883_v22 }
  0xb0   : > { %898 = vst [vmem:[%s1529_s9 + $0x68] sm:$0xff] %v883_v22  ;;  %899 = vst [vmem:[%s1529_s9 + $0x70] sm:$0xff] %v883_v22 }
  0xb1   : > { %900 = vst [vmem:[%s1529_s9 + $0x78] sm:$0xff] %v883_v22  ;;  %901 = vst [vmem:[%s1529_s9 + $0x80] sm:$0xff] %v883_v22 }
  0xb2   : > { %902 = vst [vmem:[%s1529_s9 + $0x88] sm:$0xff] %v883_v22  ;;  %903 = vst [vmem:[%s1529_s9 + $0x90] sm:$0xff] %v883_v22 }
  0xeb   : > { %v361_v23 = vpop.f32.mrb[0].mxu0  ;;  %v432_v24 = vpop.f32.mrb[0].mxu1 }
  0xec   : > { %v362_v25 = vadd.f32 %v361_v23, %v1524_v21  ;;  %v363_v26 = vpop.f32.mrb[1].mxu0  ;;  %v434_v27 = vpop.f32.mrb[1].mxu1  ;;  %v433_v36 = vadd.f32 %v432_v24, %v1524_v21 }
  0xed   : > { %v364_v28 = vadd.f32 %v363_v26, %v1524_v21  ;;  %v435_v31 = vadd.f32 %v434_v27, %v1524_v21 }
  0xee   : > { %v863_v29 = vmax.f32 %v362_v25, 0.0  ;;  %v865_v42 = vmax.f32 %v433_v36, 0.0 }
  0xef   : > { %v864_v30 = vmax.f32 %v364_v28, 0.0  ;;  %v503_v32 = vpop.f32.mrb[2].mxu0  ;;  %v574_v33 = vpop.f32.mrb[2].mxu1  ;;  %v866_v37 = vmax.f32 %v435_v31, 0.0 }
  0xf0   : > { %v505_v34 = vpop.f32.mrb[3].mxu0  ;;  %v576_v35 = vpop.f32.mrb[3].mxu1  ;;  %907 = vrot.lane.b32.xlu1 %v863_v29, %s1388_s10  ;;  %v504_v47 = vadd.f32 %v503_v32, %v1524_v21  ;;  %v575_v48 = vadd.f32 %v574_v33, %v1524_v21  ;;  %s1409_s10 = smov 94  }
  0xf1   : > { %925 = vrot.lane.b32.xlu0 %v864_v30, %s1389_s11  ;;  %v506_v51 = vadd.f32 %v505_v34, %v1524_v21  ;;  %v577_v53 = vadd.f32 %v576_v35, %v1524_v21  ;;  %s1410_s11 = smov 86  }
  0xf2   : > { %v867_v49 = vmax.f32 %v504_v47, 0.0  ;;  %v869_v50 = vmax.f32 %v575_v48, 0.0 }
  0xf3   : > { %v645_v38 = vpop.f32.mrb[4].mxu0  ;;  %v716_v39 = vpop.f32.mrb[4].mxu1  ;;  %v868_v52 = vmax.f32 %v506_v51, 0.0  ;;  %v870_v55 = vmax.f32 %v577_v53, 0.0 }
  0xf4   : > { %v647_v40 = vpop.f32.mrb[5].mxu0  ;;  %v718_v41 = vpop.f32.mrb[5].mxu1  ;;  %912 = vrot.lane.b32.xlu1 %v863_v29, %s1390_s12  ;;  %v646_v54 = vadd.f32 %v645_v38, %v1524_v21  ;;  %v717_v57 = vadd.f32 %v716_v39, %v1524_v21  ;;  %s1411_s12 = smov 106  }
  0xf5   : > { %951 = vrot.lane.b32.xlu0 %v866_v37, %s1391_s13  ;;  %v648_v58 = vadd.f32 %v647_v40, %v1524_v21  ;;  %v719_v61 = vadd.f32 %v718_v41, %v1524_v21  ;;  %s1412_s13 = smov 102  }
  0xf6   : > { %v871_v56 = vmax.f32 %v646_v54, 0.0  ;;  %v873_v59 = vmax.f32 %v717_v57, 0.0 }
  0xf7   : > { %v787_v43 = vpop.f32.mrb[6].mxu0  ;;  %v858_v44 = vpop.f32.mrb[6].mxu1  ;;  %v872_v60 = vmax.f32 %v648_v58, 0.0  ;;  %v874_v62 = vmax.f32 %v719_v61, 0.0 }
  0xf8   : > { %v789_v45 = vpop.f32.mrb[7].mxu0  ;;  %v1555_v46 = vpop.f32.mrb[7].mxu1  ;;  %938 = vrot.lane.b32.xlu1 %v865_v42, %s1392_s19  ;;  %v788_v63 = vadd.f32 %v787_v43, %v1524_v21  ;;  %v859_v2 = vadd.f32 %v858_v44, %v1524_v21  ;;  %s1413_s19 = smov 110  }
  0xf9   : > { %920 = vrot.lane.b32.xlu0 %v864_v30, %s1393_s20  ;;  %v790_v1 = vadd.f32 %v789_v45, %v1524_v21  ;;  %s1414_s20 = smov 114   ;;  %v861_v5 = vadd.f32 %v1555_v46, %v1524_v21 }
  0xfa   : > { %v875_v0 = vmax.f32 %v788_v63, 0.0  ;;  %v877_v4 = vmax.f32 %v859_v2, 0.0 }
  0xfb   : > { %v876_v3 = vmax.f32 %v790_v1, 0.0  ;;  %v878_v6 = vmax.f32 %v861_v5, 0.0 }
  0xfc   : > { %933 = vrot.lane.b32.xlu1 %v865_v42, %s1394_s21  ;;  %s1415_s21 = smov 122  }
  0xfd   : > { %946 = vrot.lane.b32.xlu0 %v866_v37, %s1395_s22  ;;  %s1416_s22 = smov 118  }
 0x100   : > { %964 = vrot.lane.b32.xlu1 %v867_v49, %s1396_s23  ;;  %s1417_s23 = smov 126  }
 0x101   : > { %990 = vrot.lane.b32.xlu0 %v869_v50, %s1397_s24  ;;  %s1418_s24 = smov 2  }
 0x104   : > { %959 = vrot.lane.b32.xlu1 %v867_v49, %s1398_s25  ;;  %s1419_s25 = smov 6  }
 0x105   : > { %977 = vrot.lane.b32.xlu0 %v868_v52, %s1399_s26 }
 0x108   : > { %985 = vrot.lane.b32.xlu1 %v869_v50, %s1400_s27 }
 0x109   : > { %972 = vrot.lane.b32.xlu0 %v868_v52, %s1401_s28 }
 0x10c   : > { %998 = vrot.lane.b32.xlu1 %v870_v55, %s1402_s29 }
 0x10d   : > { %1011 = vrot.lane.b32.xlu0 %v871_v56, %s1403_s30 }
 0x110   : > { %1005 = vrot.lane.b32.xlu1 %v870_v55, %s1404_s4 }
 0x111   : > { %1037 = vrot.lane.b32.xlu0 %v873_v59, %s1405_s5 }
 0x114   : > { %1024 = vrot.lane.b32.xlu1 %v872_v60, %s1406_s6 }
 0x115   : > { %1018 = vrot.lane.b32.xlu0 %v871_v56, %s1407_s7 }
 0x118   : > { %1050 = vrot.lane.b32.xlu1 %v874_v62, %s1408_s8 }
 0x119   : > { %1044 = vrot.lane.b32.xlu0 %v873_v59, %s1409_s10 }
 0x11c   : > { %1031 = vrot.lane.b32.xlu1 %v872_v60, %s1410_s11 }
 0x11d   : > { %1063 = vrot.lane.b32.xlu0 %v875_v0, %s1411_s12 }
 0x120   : > { %1057 = vrot.lane.b32.xlu1 %v874_v62, %s1412_s13 }
 0x121   : > { %1070 = vrot.lane.b32.xlu0 %v875_v0, %s1413_s19 }
 0x124   : > { %1076 = vrot.lane.b32.xlu1 %v876_v3, %s1414_s20 }
 0x125   : > { %1089 = vrot.lane.b32.xlu0 %v877_v4, %s1415_s21 }
 0x128   : > { %1083 = vrot.lane.b32.xlu1 %v876_v3, %s1416_s22 }
 0x129   : > { %1096 = vrot.lane.b32.xlu0 %v877_v4, %s1417_s23 }
 0x12c   : > { %1102 = vrot.lane.b32.xlu1 %v878_v6, %s1418_s24 }
 0x130   : > { %1107 = vrot.lane.b32.xlu1 %v878_v6, %s1419_s25 }
 0x162   : > { %v908_v7 = vpop.permute.xlu1 %907 }
 0x163   : > { %911 = vst.msk [vmem:[%s1529_s9 + $0x8] sm:$0xff] %vm910_vm3, %v908_v7  ;;  %v926_v8 = vpop.permute.xlu0 %925  ;;  %vm982_vm3 = vcmask 441344  }
 0x164   : > { %931 = vst.msk [vmem:[%s1529_s9 + $0x18] sm:$0xff] %vm930_vm4, %v926_v8  ;;  %vm988_vm4 = vcmask 998864  }
 0x166   : > { %v913_v9 = vpop.permute.xlu1 %912 }
 0x167   : > { %916 = vst.msk [vmem:[%s1529_s9 + $0x8] sm:$0xff] %vm915_vm5, %v913_v9  ;;  %v952_v10 = vpop.permute.xlu0 %951  ;;  %vm993_vm5 = vcmask 1048560  }
 0x168   : > { %918 = vst.msk [vmem:[%s1529_s9 + $0x10] sm:$0xff] %vm917_vm6, %v913_v9  ;;  %vm975_vm6 = vcmask 933264  }
 0x169   : > { %957 = vst.msk [vmem:[%s1529_s9 + $0x28] sm:$0xff] %vm956_vm7, %v952_v10  ;;  %vm980_vm7 = vcmask 1048496  }
 0x16a   : > { %v939_v11 = vpop.permute.xlu1 %938 }
 0x16b   : > { %944 = vst.msk [vmem:[%s1529_s9 + $0x20] sm:$0xff] %vm943_vm8, %v939_v11  ;;  %v921_v12 = vpop.permute.xlu0 %920  ;;  %vm1001_vm8 = vcmask 1048080  }
 0x16c   : > { %924 = vst.msk [vmem:[%s1529_s9 + $0x10] sm:$0xff] %vm923_vm9, %v921_v12  ;;  %vm1003_vm9 = vcmask 15360  }
 0x16d   : > { %929 = vst.msk [vmem:[%s1529_s9 + $0x10] sm:$0xff] %vm928_vm10, %v926_v8  ;;  %vm1016_vm10 = vcmask 80896  }
 0x16e   : > { %v934_v13 = vpop.permute.xlu1 %933 }
 0x16f   : > { %937 = vst.msk [vmem:[%s1529_s9 + $0x18] sm:$0xff] %vm936_vm11, %v934_v13  ;;  %v947_v14 = vpop.permute.xlu0 %946  ;;  %vm1008_vm11 = vcmask 572464  }
 0x170   : > { %942 = vst.msk [vmem:[%s1529_s9 + $0x18] sm:$0xff] %vm941_vm12, %v939_v11  ;;  %vm1014_vm12 = vcmask 1048144  }
 0x171   : > { %950 = vst.msk [vmem:[%s1529_s9 + $0x20] sm:$0xff] %vm949_vm13, %v947_v14  ;;  %vm1042_vm13 = vcmask 211968  }
 0x172   : > { %955 = vst.msk [vmem:[%s1529_s9 + $0x20] sm:$0xff] %vm954_vm14, %v952_v10  ;;  %v965_v15 = vpop.permute.xlu1 %964  ;;  %vm1029_vm14 = vcmask 146432  }
 0x173   : > { %970 = vst.msk [vmem:[%s1529_s9 + $0x30] sm:$0xff] %vm969_vm15, %v965_v15  ;;  %v991_v16 = vpop.permute.xlu0 %990  ;;  %vm1021_vm15 = vcmask 638064  }
 0x174   : > { %996 = vst.msk [vmem:[%s1529_s9 + $0x40] sm:$0xff] %vm995_vm0, %v991_v16  ;;  %vm1027_vm0 = vcmask 1048208  }
 0x176   : > { %v960_v17 = vpop.permute.xlu1 %959 }
 0x177   : > { %963 = vst.msk [vmem:[%s1529_s9 + $0x28] sm:$0xff] %vm962_vm1, %v960_v17  ;;  %v978_v18 = vpop.permute.xlu0 %977  ;;  %vm1055_vm1 = vcmask 277504  }
 0x178   : > { %968 = vst.msk [vmem:[%s1529_s9 + $0x28] sm:$0xff] %vm967_vm2, %v965_v15  ;;  %vm1047_vm2 = vcmask 769264  }
 0x179   : > { %983 = vst.msk [vmem:[%s1529_s9 + $0x38] sm:$0xff] %vm982_vm3, %v978_v18  ;;  %vm1053_vm3 = vcmask 1048336  }
 0x17a   : > { %v986_v19 = vpop.permute.xlu1 %985 }
 0x17b   : > { %989 = vst.msk [vmem:[%s1529_s9 + $0x38] sm:$0xff] %vm988_vm4, %v986_v19  ;;  %v973_v20 = vpop.permute.xlu0 %972  ;;  %vm1034_vm4 = vcmask 703664  }
 0x17c   : > { %994 = vst.msk [vmem:[%s1529_s9 + $0x38] sm:$0xff] %vm993_vm5, %v991_v16  ;;  %vm1040_vm5 = vcmask 1048272  }
 0x17d   : > { %976 = vst.msk [vmem:[%s1529_s9 + $0x30] sm:$0xff] %vm975_vm6, %v973_v20  ;;  %vm1068_vm6 = vcmask 343040  }
 0x17e   : > { %981 = vst.msk [vmem:[%s1529_s9 + $0x30] sm:$0xff] %vm980_vm7, %v978_v18  ;;  %v999_v21 = vpop.permute.xlu1 %998  ;;  %vm1060_vm7 = vcmask 834864  }
 0x17f   : > { %1002 = vst.msk [vmem:[%s1529_s9 + $0x40] sm:$0xff] %vm1001_vm8, %v999_v21  ;;  %v1012_v22 = vpop.permute.xlu0 %1011  ;;  %vm1066_vm8 = vcmask 1048400  }
 0x180   : > { %1004 = vst.msk [vmem:[%s1529_s9 + $0x48] sm:$0xff] %vm1003_vm9, %v999_v21  ;;  %vm1073_vm9 = vcmask 900464  }
 0x181   : > { %1017 = vst.msk [vmem:[%s1529_s9 + $0x50] sm:$0xff] %vm1016_vm10, %v1012_v22  ;;  %vm1079_vm10 = vcmask 1048464  }
 0x182   : > { %v1006_v23 = vpop.permute.xlu1 %1005 }
 0x183   : > { %1009 = vst.msk [vmem:[%s1529_s9 + $0x48] sm:$0xff] %vm1008_vm11, %v1006_v23  ;;  %v1038_v24 = vpop.permute.xlu0 %1037  ;;  %vm1081_vm11 = vcmask 408576  }
 0x184   : > { %1015 = vst.msk [vmem:[%s1529_s9 + $0x48] sm:$0xff] %vm1014_vm12, %v1012_v22  ;;  %vm1094_vm12 = vcmask 474112  }
 0x185   : > { %1043 = vst.msk [vmem:[%s1529_s9 + $0x60] sm:$0xff] %vm1042_vm13, %v1038_v24  ;;  %vm1086_vm13 = vcmask 966064  }
 0x186   : > { %v1025_v25 = vpop.permute.xlu1 %1024 }
 0x187   : > { %1030 = vst.msk [vmem:[%s1529_s9 + $0x58] sm:$0xff] %vm1029_vm14, %v1025_v25  ;;  %v1019_v26 = vpop.permute.xlu0 %1018  ;;  %vm1092_vm14 = vcmask 1048528  }
 0x188   : > { %1022 = vst.msk [vmem:[%s1529_s9 + $0x50] sm:$0xff] %vm1021_vm15, %v1019_v26  ;;  %vm1099_vm15 = vcmask 1031664  }
 0x189   : > { %1028 = vst.msk [vmem:[%s1529_s9 + $0x50] sm:$0xff] %vm1027_vm0, %v1025_v25  ;;  %vm1105_vm0 = vcmask 539664  }
 0x18a   : > { %v1051_v27 = vpop.permute.xlu1 %1050 }
 0x18b   : > { %1056 = vst.msk [vmem:[%s1529_s9 + $0x68] sm:$0xff] %vm1055_vm1, %v1051_v27  ;;  %v1045_v28 = vpop.permute.xlu0 %1044  ;;  %vm1110_vm1 = vcmask 1048112  }
 0x18c   : > { %1048 = vst.msk [vmem:[%s1529_s9 + $0x60] sm:$0xff] %vm1047_vm2, %v1045_v28  ;;  %vm1112_vm2 = vcmask 48128  }
 0x18d   : > { %1054 = vst.msk [vmem:[%s1529_s9 + $0x60] sm:$0xff] %vm1053_vm3, %v1051_v27 }
 0x18e   : > { %v1032_v29 = vpop.permute.xlu1 %1031 }
 0x18f   : > { %1035 = vst.msk [vmem:[%s1529_s9 + $0x58] sm:$0xff] %vm1034_vm4, %v1032_v29  ;;  %v1064_v30 = vpop.permute.xlu0 %1063 }
 0x190   : > { %1041 = vst.msk [vmem:[%s1529_s9 + $0x58] sm:$0xff] %vm1040_vm5, %v1038_v24 }
 0x191   : > { %1069 = vst.msk [vmem:[%s1529_s9 + $0x70] sm:$0xff] %vm1068_vm6, %v1064_v30 }
 0x192   : > { %v1058_v31 = vpop.permute.xlu1 %1057 }
 0x193   : > { %1061 = vst.msk [vmem:[%s1529_s9 + $0x68] sm:$0xff] %vm1060_vm7, %v1058_v31  ;;  %v1071_v32 = vpop.permute.xlu0 %1070 }
 0x194   : > { %1067 = vst.msk [vmem:[%s1529_s9 + $0x68] sm:$0xff] %vm1066_vm8, %v1064_v30 }
 0x195   : > { %1074 = vst.msk [vmem:[%s1529_s9 + $0x70] sm:$0xff] %vm1073_vm9, %v1071_v32 }
 0x196   : > { %v1077_v33 = vpop.permute.xlu1 %1076 }
 0x197   : > { %1080 = vst.msk [vmem:[%s1529_s9 + $0x70] sm:$0xff] %vm1079_vm10, %v1077_v33  ;;  %v1090_v34 = vpop.permute.xlu0 %1089 }
 0x198   : > { %1082 = vst.msk [vmem:[%s1529_s9 + $0x78] sm:$0xff] %vm1081_vm11, %v1077_v33 }
 0x199   : > { %1095 = vst.msk [vmem:[%s1529_s9 + $0x80] sm:$0xff] %vm1094_vm12, %v1090_v34 }
 0x19a   : > { %v1084_v35 = vpop.permute.xlu1 %1083 }
 0x19b   : > { %1087 = vst.msk [vmem:[%s1529_s9 + $0x78] sm:$0xff] %vm1086_vm13, %v1084_v35  ;;  %v1097_v36 = vpop.permute.xlu0 %1096 }
 0x19c   : > { %1093 = vst.msk [vmem:[%s1529_s9 + $0x78] sm:$0xff] %vm1092_vm14, %v1090_v34 }
 0x19d   : > { %1100 = vst.msk [vmem:[%s1529_s9 + $0x80] sm:$0xff] %vm1099_vm15, %v1097_v36 }
 0x19e   : > { %v1103_v37 = vpop.permute.xlu1 %1102 }
 0x19f   : > { %1106 = vst.msk [vmem:[%s1529_s9 + $0x88] sm:$0xff] %vm1105_vm0, %v1103_v37 }
 0x1a2   : > { %v1108_v38 = vpop.permute.xlu1 %1107 }
 0x1a3   : > { %1111 = vst.msk [vmem:[%s1529_s9 + $0x88] sm:$0xff] %vm1110_vm1, %v1108_v38 }
 0x1a4   : > { %1113 = vst.msk [vmem:[%s1529_s9 + $0x90] sm:$0xff] %vm1112_vm2, %v1108_v38 }
 0x1a5 PF: > { %s13_s16 = sadd.s32 1, %s1384_s16   ;;  %s1637_s12 = smov %s1376_s14 }
 0x1a6   : > { %p10_p7 = scmp.ge.s32.totalorder %s13_s16, 6   ;;  %s1638_s13 = smov %s1380_s15 }
 0x1a7   : > { %s1639_s14 = smov %s1642_s17  ;;  %s1640_s15 = smov %s1646_s18 }
 0x1a8   :  { %12 = sbr.rel (!%p10_p7) target bundleno = 3 (0x3), region = 68 }

</bundles_post_ra>
